<compile_context>
chip_gen: v6e
topology: v6e:2x2x1
jax: 0.10.0
libtpu: 0.0.40
codegen_flags: <defaults>
</compile_context>

<pallas_src>
import math

import jax
import jax.numpy as jnp
from jax import lax
from jax.experimental import pallas as pl
from jax.experimental.pallas import tpu as pltpu

NEG_SLOPE = 0.01  # torch.nn.LeakyReLU default negative_slope


def _round_up(a: int, m: int) -> int:
    return ((a + m - 1) // m) * m


def _vmem_capacity_bytes() -> int:
    """Physical VMEM per core; conservative 64 MiB fallback (v7x-sized)."""
    try:
        return int(pltpu.get_tpu_info().vmem_capacity_bytes)
    except Exception:
        return 64 << 20


def _choose_tile_j(n: int, c_out: int, tile_j=None, target_lanes: int = 2048) -> int:
    """Column tile such that TILE_J*C_out is a multiple of 128 (lane-dense stores)."""
    base = 128 // math.gcd(c_out, 128)          # minimal 128-aligned j tile
    if tile_j is not None:
        return _round_up(max(int(tile_j), 1), base)
    units_cover = pl.cdiv(n, base)              # units needed to cover N
    units_max = max(1, target_lanes // (base * c_out))
    return base * max(1, min(units_cover, units_max))


def _choose_tile_i(n: int, lane_bytes: int, budget: int, tile_i=None,
                   max_rows_cap: int = 1024) -> int:
    """Row tile (multiple of 8) keeping the output block under `budget` bytes.

    Prefers a tile dividing round_up(N, 8) so no padded tail rows are computed/written.
    """
    n8 = _round_up(n, 8)
    if tile_i is not None:
        return min(_round_up(max(int(tile_i), 8), 8), n8)
    max_rows = max(8, (budget // max(1, lane_bytes)) // 8 * 8)
    max_rows = min(max_rows, max_rows_cap, n8)
    t = max_rows
    while t >= 8:
        if n8 % t == 0:
            break
        t -= 8
    if t >= 8 and t * 4 >= max_rows:            # accept a divisor unless it is tiny
        return t
    return max_rows


def _eq1to2_kernel(y2f_ref, yc_ref, rep_ref, o_ref):
    """Builds one (TILE_I, TILE_J*C_out) lane-dense slab of the output.

    y2f_ref : (1, 1, TILE_J*C_out)     column term (x_j @ W2) for this j tile
    yc_ref  : (1, 2, TILE_I, C_out)    [0]=row term (x_i@W3+S@W4+b), [1]=diag term
    rep_ref : (C_out, TILE_J*C_out)    0/1 replication matrix (resident, DMA'd once)
    o_ref   : (1, TILE_I, TILE_J*C_out)
    """
    tile_i = yc_ref.shape[2]
    c_out = yc_ref.shape[3]
    lanes = o_ref.shape[2]
    tile_j = lanes // c_out

    yrow = yc_ref[0, 0]          # (TILE_I, C_out)
    ydiag = yc_ref[0, 1]         # (TILE_I, C_out)
    rep = rep_ref[...]           # (C_out, lanes)

    # Row term replicated along j on the MXU, plus the broadcast column term.
    base = jnp.dot(yrow, rep, preferred_element_type=jnp.float32)   # (TILE_I, lanes)
    base = base + y2f_ref[0]                                        # (1, lanes) over rows

    i_lo = pl.program_id(1) * tile_i
    j_lo = pl.program_id(2) * tile_j
    intersects = (i_lo < j_lo + tile_j) & (j_lo < i_lo + tile_i)

    def _activate_store(v):
        v = jnp.maximum(v, NEG_SLOPE * v)        # leaky_relu (activate_lin=True)
        o_ref[...] = v[None].astype(o_ref.dtype)

    @pl.when(intersects)
    def _():
        # Diagonal contribution only where this i-tile meets this j-tile.
        drep = jnp.dot(ydiag, rep, preferred_element_type=jnp.float32)
        lane = lax.broadcasted_iota(jnp.int32, (tile_i, lanes), 1)
        row = lax.broadcasted_iota(jnp.int32, (tile_i, lanes), 0)
        if c_out & (c_out - 1) == 0:
            # cheap shift/compare when C_out is a power of two
            on_diag = (lane >> int(math.log2(c_out))) == (row + (i_lo - j_lo))
        else:
            lo = (row + (i_lo - j_lo)) * c_out
            on_diag = (lane >= lo) & (lane < lo + c_out)
        _activate_store(base + jnp.where(on_diag, drep, 0.0))

    @pl.when(jnp.logical_not(intersects))
    def _():
        _activate_store(base)


def eq1to2_pallas(x, coefs, bias, *, out_dtype=None, tile_i=None, tile_j=None,
                  block_budget_bytes=None):
    """x: (B, N, C_in), coefs: (C_in, C_out, 5), bias: (C_out,) -> (B, N, N, C_out)."""
    B, N, C_in = x.shape
    C_out = coefs.shape[1]
    out_dtype = jnp.dtype(x.dtype if out_dtype is None else out_dtype)
    itemsize = out_dtype.itemsize

    xf = x.astype(jnp.float32)
    bf = bias.astype(jnp.float32)
    w0, w1, w2, w3, w4 = (coefs[:, :, k].astype(jnp.float32) for k in range(5))

    # --- tiny O(N*C) precompute, hoisted out of the per-tile loop (one fused matmul) ---
    hi = jax.lax.Precision.HIGHEST
    s = jnp.sum(xf, axis=1)                                             # (B, C_in): 'sum' agg
    y = jnp.dot(xf, jnp.concatenate([w2, w3, w0], axis=1), precision=hi)   # (B, N, 3*C_out)
    sy = jnp.dot(s, jnp.concatenate([w4, w1], axis=1), precision=hi)       # (B, 2*C_out)

    y2 = y[..., :C_out]                                                         # x_j @ W2
    yrow = y[..., C_out:2 * C_out] + sy[:, None, :C_out] + bf[None, None, :]    # x_i@W3+S@W4+b
    ydiag = y[..., 2 * C_out:] + sy[:, None, C_out:]                            # x_i@W0+S@W1

    # --- tiling: per-step VMEM independent of N, lane width a multiple of 128 ---
    cap = _vmem_capacity_bytes()
    if block_budget_bytes is None:
        block_budget_bytes = min(6 << 20, max(2 << 20, cap // 24))   # ~5.3 MiB v5e/v6e, ~2.7 MiB v7x

    tile_j = _choose_tile_j(N, C_out, tile_j)
    lanes = tile_j * C_out                                   # multiple of 128
    n_j_pad = _round_up(N, tile_j)

    tile_i = _choose_tile_i(N, lanes * itemsize, block_budget_bytes, tile_i)
    n_i_pad = _round_up(N, tile_i)

    # Column term, lane-dense and j-padded: [b, 0, j*C_out + c] = (x_j @ W2)[b, j, c]
    if n_j_pad != N:
        y2 = jnp.pad(y2, ((0, 0), (0, n_j_pad - N), (0, 0)))
    y2f = y2.reshape(B, 1, n_j_pad * C_out)

    # Row + diag terms stacked on one leading axis -> single per-i-tile DMA.
    ycomb = jnp.stack([yrow, ydiag], axis=1)                 # (B, 2, N, C_out)
    if n_i_pad != N:
        ycomb = jnp.pad(ycomb, ((0, 0), (0, 0), (0, n_i_pad - N), (0, 0)))

    # Tiny 0/1 replication matrix: (yrow @ rep)[i, j*C_out + c] == yrow[i, c].
    # Constant index_map -> fetched once, stays resident in VMEM.
    rep = jnp.tile(jnp.eye(C_out, dtype=jnp.float32), (1, tile_j))   # (C_out, lanes)

    nc_pad = n_j_pad * C_out
    grid = (B, n_i_pad // tile_i, n_j_pad // tile_j)

    cost = pl.CostEstimate(
        flops=int(2 * B * n_i_pad * nc_pad * C_out),
        transcendentals=0,
        bytes_accessed=int(B * n_i_pad * nc_pad * itemsize
                           + 4 * (ycomb.size * grid[2] + y2f.size * grid[1] + rep.size)),
    )

    out_flat = pl.pallas_call(
        _eq1to2_kernel,
        out_shape=jax.ShapeDtypeStruct((B, n_i_pad, nc_pad), out_dtype),
        grid=grid,
        in_specs=[
            pl.BlockSpec((1, 1, lanes), lambda b, ti, tj: (b, 0, tj)),
            pl.BlockSpec((1, 2, tile_i, C_out), lambda b, ti, tj: (b, 0, ti, 0)),
            pl.BlockSpec((C_out, lanes), lambda b, ti, tj: (0, 0)),
        ],
        out_specs=pl.BlockSpec((1, tile_i, lanes), lambda b, ti, tj: (b, ti, tj)),
        compiler_params=pltpu.CompilerParams(
            dimension_semantics=("parallel", "parallel", "parallel"),
            vmem_limit_bytes=40 * 1024 * 1024,   # headroom even on v7x's 64 MiB/core
        ),
        cost_estimate=cost,
    )(y2f, ycomb, rep)

    out = out_flat.reshape(B, n_i_pad, n_j_pad, C_out)
    if n_i_pad != N or n_j_pad != N:
        out = out[:, :N, :N, :]
    return out


def eq1to2_reference(x, coefs, bias):
    """Pure-JAX reference mirroring the PyTorch forward (config='s', defaults)."""
    B, N, C = x.shape
    xp = jnp.transpose(x, (0, 2, 1))                          # B, C, N
    S = jnp.sum(xp, axis=-1)                                  # B, C
    eye = jnp.eye(N, dtype=x.dtype)
    op1 = xp[:, :, :, None] * eye                             # diag_embed(x)
    op2 = S[:, :, None, None] * eye                           # diag_embed(sum)
    op3 = jnp.broadcast_to(xp[:, :, None, :], (B, C, N, N))   # x_j
    op4 = jnp.broadcast_to(xp[:, :, :, None], (B, C, N, N))   # x_i
    op5 = jnp.broadcast_to(S[:, :, None, None], (B, C, N, N))
    ops = jnp.stack([op1, op2, op3, op4, op5], axis=2)        # B, C, 5, N, N
    out = jnp.einsum('dsb,ndbij->nijs', coefs, ops,
                     precision=jax.lax.Precision.HIGHEST) + bias.reshape(1, 1, -1)
    return jnp.where(out >= 0, out, NEG_SLOPE * out)


if __name__ == "__main__":
    basis_dim = 5

    def run_case(key, B, N, C_in, C_out, **kw):
        kx, kc, kb = jax.random.split(key, 3)
        x = jax.random.normal(kx, (B, N, C_in), dtype=jnp.float32)
        # coefs ~ Normal(0, sqrt(2/(in_dim*basis_dim))) as in __init__; bias nonzero to
        # exercise the bias path (module init is zeros).
        std = (2.0 / (C_in * basis_dim)) ** 0.5
        coefs = std * jax.random.normal(kc, (C_in, C_out, basis_dim), dtype=jnp.float32)
        bias = 0.1 * jax.random.normal(kb, (C_out,), dtype=jnp.float32)

        out = jax.block_until_ready(eq1to2_pallas(x, coefs, bias, **kw))
        ref = eq1to2_reference(x, coefs, bias)
        assert out.shape == (B, N, N, C_out), out.shape
        assert jnp.allclose(out, ref, atol=1e-4, rtol=1e-4), "mismatch vs reference"

    keys = jax.random.split(jax.random.PRNGKey(0), 4)
    run_case(keys[0], B=2, N=16, C_in=4, C_out=8)                         # single tile, lanes=128
    run_case(keys[1], B=2, N=20, C_in=4, C_out=8, tile_i=8, tile_j=16)    # i/j tiling + row/col pad
    run_case(keys[2], B=1, N=48, C_in=3, C_out=12, tile_i=16)             # non-pow2 C_out path
    run_case(keys[3], B=2, N=40, C_in=4, C_out=8, tile_i=16, tile_j=16)   # diag-skip on off-diag tiles

    print("KERNEL_OK")
</pallas_src>

<mosaic_0001>
module attributes {stable_mosaic.version = 11 : i64} {
  func.func @_eq1to2_kernel(%arg0: i32, %arg1: i32, %arg2: i32, %arg3: memref<1x1x128xf32, #tpu.memory_space<vmem>>, %arg4: memref<1x2x16x8xf32, #tpu.memory_space<vmem>>, %arg5: memref<8x128xf32, #tpu.memory_space<vmem>>, %arg6: memref<1x16x128xf32, #tpu.memory_space<vmem>>) attributes {dimension_semantics = [#tpu.dimension_semantics<parallel>, #tpu.dimension_semantics<parallel>, #tpu.dimension_semantics<parallel>], iteration_bounds = array<i64: 2, 1, 1>, scalar_prefetch = 0 : i64, scratch_operands = 0 : i64, tpu.core_type = #tpu.core_type<tc>, window_params = [{transform_indices = @transform_0, window_bounds = array<i64: 1, 1, 128>}, {transform_indices = @transform_1, window_bounds = array<i64: 1, 2, 16, 8>}, {pipeline_mode = #tpu.pipeline_mode<synchronous>, transform_indices = @transform_2, window_bounds = array<i64: 8, 128>}, {transform_indices = @transform_3, window_bounds = array<i64: 1, 16, 128>}]} {
    %c0 = arith.constant 0 : index
    %c0_0 = arith.constant 0 : index
    %c0_1 = arith.constant 0 : index
    %c0_2 = arith.constant 0 : index
    %0 = vector.load %arg4[%c0, %c0_0, %c0_1, %c0_2] : memref<1x2x16x8xf32, #tpu.memory_space<vmem>>, vector<1x1x16x8xf32>
    %1 = vector.shape_cast %0 : vector<1x1x16x8xf32> to vector<16x8xf32>
    %c0_3 = arith.constant 0 : index
    %c1 = arith.constant 1 : index
    %c0_4 = arith.constant 0 : index
    %c0_5 = arith.constant 0 : index
    %2 = vector.load %arg4[%c0_3, %c1, %c0_4, %c0_5] : memref<1x2x16x8xf32, #tpu.memory_space<vmem>>, vector<1x1x16x8xf32>
    %3 = vector.shape_cast %2 : vector<1x1x16x8xf32> to vector<16x8xf32>
    %c0_6 = arith.constant 0 : index
    %c0_7 = arith.constant 0 : index
    %4 = vector.load %arg5[%c0_6, %c0_7] : memref<8x128xf32, #tpu.memory_space<vmem>>, vector<8x128xf32>
    %cst = arith.constant dense<0.000000e+00> : vector<16x128xf32>
    %5 = tpu.matmul %1, %4, %cst {dimension_numbers = #tpu.dot_dimension_numbers<[1], [0], [0], [1], [0, 0, 1, 1], [], []>} : vector<16x8xf32>, vector<8x128xf32>, vector<16x128xf32> -> vector<16x128xf32>
    %c0_8 = arith.constant 0 : index
    %c0_9 = arith.constant 0 : index
    %c0_10 = arith.constant 0 : index
    %6 = vector.load %arg3[%c0_8, %c0_9, %c0_10] : memref<1x1x128xf32, #tpu.memory_space<vmem>>, vector<1x1x128xf32>
    %7 = vector.shape_cast %6 : vector<1x1x128xf32> to vector<1x128xf32>
    %8 = vector.broadcast %7 : vector<1x128xf32> to vector<16x128xf32>
    %9 = arith.addf %5, %8 : vector<16x128xf32>
    %c16_i32 = arith.constant 16 : i32
    %10 = arith.muli %arg1, %c16_i32 : i32
    %c16_i32_11 = arith.constant 16 : i32
    %11 = arith.muli %arg2, %c16_i32_11 : i32
    %c16_i32_12 = arith.constant 16 : i32
    %12 = arith.addi %11, %c16_i32_12 : i32
    %13 = arith.cmpi slt, %10, %12 : i32
    %c16_i32_13 = arith.constant 16 : i32
    %14 = arith.addi %10, %c16_i32_13 : i32
    %15 = arith.cmpi slt, %11, %14 : i32
    %16 = arith.andi %13, %15 : i1
    %17 = arith.extui %16 : i1 to i32
    %c0_i32 = arith.constant 0 : i32
    %18 = arith.cmpi ne, %17, %c0_i32 : i32
    scf.if %18 {
      %cst_15 = arith.constant dense<0.000000e+00> : vector<16x128xf32>
      %22 = tpu.matmul %3, %4, %cst_15 {dimension_numbers = #tpu.dot_dimension_numbers<[1], [0], [0], [1], [0, 0, 1, 1], [], []>} : vector<16x8xf32>, vector<8x128xf32>, vector<16x128xf32> -> vector<16x128xf32>
      %23 = tpu.iota {dimensions = array<i32: 1>} : vector<16x128xi32>
      %24 = tpu.iota {dimensions = array<i32: 0>} : vector<16x128xi32>
      %c3_i32 = arith.constant 3 : i32
      %25 = vector.broadcast %c3_i32 : i32 to vector<16x128xi32>
      %26 = arith.shrsi %23, %25 : vector<16x128xi32>
      %27 = arith.subi %10, %11 : i32
      %28 = vector.broadcast %27 : i32 to vector<16x128xi32>
      %29 = arith.addi %24, %28 : vector<16x128xi32>
      %30 = arith.cmpi eq, %26, %29 : vector<16x128xi32>
      %cst_16 = arith.constant 0.000000e+00 : f32
      %31 = vector.broadcast %cst_16 : f32 to vector<16x128xf32>
      %32 = arith.select %30, %22, %31 : vector<16x128xi1>, vector<16x128xf32>
      %33 = arith.addf %9, %32 : vector<16x128xf32>
      %cst_17 = arith.constant 0.00999999977 : f32
      %34 = vector.broadcast %cst_17 : f32 to vector<16x128xf32>
      %35 = arith.mulf %34, %33 : vector<16x128xf32>
      %36 = arith.maximumf %33, %35 : vector<16x128xf32>
      %37 = vector.shape_cast %36 : vector<16x128xf32> to vector<1x16x128xf32>
      %c0_18 = arith.constant 0 : index
      %c0_19 = arith.constant 0 : index
      %c0_20 = arith.constant 0 : index
      %38 = vector.load %arg6[%c0_18, %c0_19, %c0_20] : memref<1x16x128xf32, #tpu.memory_space<vmem>>, vector<1x16x128xf32>
      tpu.vector_store %arg6[%c0_18, %c0_19, %c0_20], %37 {strides = array<i32>} : memref<1x16x128xf32, #tpu.memory_space<vmem>>, vector<1x16x128xf32>,
    } else {
    }
    %true = arith.constant true
    %19 = arith.xori %16, %true : i1
    %20 = arith.extui %19 : i1 to i32
    %c0_i32_14 = arith.constant 0 : i32
    %21 = arith.cmpi ne, %20, %c0_i32_14 : i32
    scf.if %21 {
      %cst_15 = arith.constant 0.00999999977 : f32
      %22 = vector.broadcast %cst_15 : f32 to vector<16x128xf32>
      %23 = arith.mulf %22, %9 : vector<16x128xf32>
      %24 = arith.maximumf %9, %23 : vector<16x128xf32>
      %25 = vector.shape_cast %24 : vector<16x128xf32> to vector<1x16x128xf32>
      %c0_16 = arith.constant 0 : index
      %c0_17 = arith.constant 0 : index
      %c0_18 = arith.constant 0 : index
      %26 = vector.load %arg6[%c0_16, %c0_17, %c0_18] : memref<1x16x128xf32, #tpu.memory_space<vmem>>, vector<1x16x128xf32>
      tpu.vector_store %arg6[%c0_16, %c0_17, %c0_18], %25 {strides = array<i32>} : memref<1x16x128xf32, #tpu.memory_space<vmem>>, vector<1x16x128xf32>,
    } else {
    }
    return
  }
  func.func @transform_0(%arg0: i32, %arg1: i32, %arg2: i32) -> (i32, i32, i32) {
    %c0_i32 = arith.constant 0 : i32
    %c0_i32_0 = arith.constant 0 : i32
    return %arg0, %c0_i32, %arg2 : i32, i32, i32
  }
  func.func @transform_1(%arg0: i32, %arg1: i32, %arg2: i32) -> (i32, i32, i32, i32) {
    %c0_i32 = arith.constant 0 : i32
    %c0_i32_0 = arith.constant 0 : i32
    %c0_i32_1 = arith.constant 0 : i32
    return %arg0, %c0_i32, %arg1, %c0_i32_0 : i32, i32, i32, i32
  }
  func.func @transform_2(%arg0: i32, %arg1: i32, %arg2: i32) -> (i32, i32) {
    %c0_i32 = arith.constant 0 : i32
    %c0_i32_0 = arith.constant 0 : i32
    %c0_i32_1 = arith.constant 0 : i32
    return %c0_i32, %c0_i32_0 : i32, i32
  }
  func.func @transform_3(%arg0: i32, %arg1: i32, %arg2: i32) -> (i32, i32, i32) {
    %c0_i32 = arith.constant 0 : i32
    return %arg0, %arg1, %arg2 : i32, i32, i32
  }
}

</mosaic_0001>

<bundles_post_ra>
// kernel: tpu_custom_call.1
= control target key start
LH: loop header
LB: loop body
LE: loop exit
PB: predicated region body
PF: predicated region fallthrough
CT: control target
= control target key end

     0   :  { %8 = vsyncpa [#allocation3], 0  ;;  %s879_s0 = inlined_call_operand.vmem [shape: f32[2,1,128], index: 0, kind: input, shape index: {}]   ;;  %s880_s1 = inlined_call_operand.vmem [shape: f32[2,2,16,8], index: 1, kind: input, shape index: {}]   ;;  %s881_s2 = inlined_call_operand.vmem [shape: f32[8,128], index: 2, kind: input, shape index: {}]   ;;  %s882_s3 = inlined_call_operand.hbm [shape: f32[2,16,128], index: 3, kind: output, shape index: {}]  }
   0x1   :  { %10 = vsyncpa [#allocation3 + $0x1], 0  ;;  %s759_s12 = smov 0   ;;  %s761_s13 = smov 0  }
   0x2   :  { %s763_s14 = smov 0   ;;  %s765_s15 = smov 0  }
   0x3   :  { %s767_s16 = smov 0   ;;  %s769_s17 = smov 0  }
   0x4 LB: > { %s563_s18 = sadd.s32 4294967295, %s734_s17   ;;  %s564_s19 = sadd.s32 4294967294, %s734_s17   ;;  %s734_s17 = sphi %s769_s17, %s16_s17   ;;  %s730_s16 = sphi %s767_s16, %s889_s16   ;;  %s726_s15 = sphi %s765_s15, %s888_s15   ;;  %s722_s14 = sphi %s763_s14, %s887_s14   ;;  %s718_s13 = sphi %s761_s13, %s886_s13   ;;  %s714_s12 = sphi %s759_s12, %s885_s12  }
   0x5   : > { %s35_s20 = sadd.s32 1, %s730_s16  ;;  %s123_s21 = sadd.s32 1, %s722_s14 }
   0x6   : > { %p37_p0 = scmp.ge.s32.totalorder %s35_s20, 2  ;;  %p133_p1 = scmp.ne.s32.totalorder %s722_s14, %s718_s13 }
   0x7   : > { %p134_p2 = scmp.eq.s32.totalorder %s563_s18, 1  ;;  %p139_p3 = scmp.ne.s32.totalorder %s718_s13, %s714_s12 }
   0x8   : > { %s891_s20 = smov (%p37_p0, %s35_s20), 0  ;;  %p140_p5 = scmp.eq.s32.totalorder %s564_s19, 1 }
   0x9   : > { %p799_p4 = por %p134_p2, %p133_p1  ;;  %s116_s23 = ssub.s32 %s730_s16, %s891_s20 }
   0xa   : > { %p567_p6 = scmp.ge.s32.totalorder %s734_s17, 1  ;;  %p121_p7 = scmp.eq.s32.totalorder %s116_s23, 0 }
   0xb   : > { %p806_p8 = por %p140_p5, %p139_p3  ;;  %p183_p9 = scmp.lt.s32.totalorder %s734_s17, 3 }
   0xc   : > { %s812_s25 = scalar_select %p121_p7, %s722_s14, %s123_s21  }
   0xd   : > { %p184_p10 = pnand %p567_p6, %p183_p9 }
   0xe   : > { %p217_p11 = scmp.lt.s32.totalorder (!%p184_p10), %s726_s15, 1  ;;  %s214_s9 = sand.u32 (!%p184_p10), 1, %s718_s13  }
   0xf   : > { %187 = sbr.rel (%p184_p10) target bundleno = 243 (0xf3), region = 32  ;;  %s568_s10 = sshll.u32 (!%p184_p10), %s214_s9, 4 }
  0x10   : > { %s216_s11 = scalar_lea.vmem (!%p184_p10), [#allocation2], %s568_s10  ;;  %s584_s19 = sshll.u32 (!%p184_p10), %s726_s15, 8 }
  0x11   : > { %s468_s18 = sshll.u32 (!%p184_p10), %s216_s11, 4  ;;  %s832_s26 = scalar_lea.hbm (!%p184_p10), %s882_s3, %s584_s19  ;;  %s827_s18 = int_to_ptr.vmem [resolvable:$true] %s468_s18 }
  0x12   : > { %s834_s27 = scalar_lea.sflag (!%p184_p10), [#allocation3], %s214_s9 }
  0x14   : > { %v239_v0 = vld [vmem:[%s881_s2] sm:$0xff]  ;;  %s218_s28 = scalar_select %p217_p11, %s726_s15, 1  ;;  %vm247_vm0 = vcmask 64512   ;;  %v420_v5 = vlaneseq }
  0x15   : > { %591 = vmatprep.subr.mxu0 %v239_v0  ;;  %596 = vmatprep.subr.mxu1 %v239_v0  ;;  %s736_s15 = smov [#allocation2]  }
  0x16   : > { %592 = vmatpush3.msra.mxu0 %v239_v0  ;;  %597 = vmatpush3.msra.mxu1 %v239_v0  ;;  %s583_s29 = sshll.u32 %s218_s28, 5  ;;  %v421_v6 = vand.u32 127, %v420_v5  ;;  %v423_v7 = vshrl.u32 %v420_v5, 7  ;;  %s222_s8 = scalar_lea.vmem %s879_s0, %s218_s28 }
  0x17   : > { %s231_s5 = scalar_lea.vmem %s880_s1, %s583_s29  ;;  %v573_v10 = vld [vmem:[%s222_s8] ss:$0 sm:$0xff]  ;;  %s658_s28 = scalar_lea.vmem %s827_s18, 256 }
  0x18   : > { %v234_v1 = vld [vmem:[%s231_s5] sm:$0xff]  ;;  %v571_v2 = vld [vmem:[%s231_s5 + $0x10] sm:$0xff]  ;;  %v235_v3 = vld [vmem:[%s231_s5 + $0x8] sm:$0xff]  ;;  %v424_v8 = vadd.s32 8, %v423_v7  ;;  %v425_v9 = vshra.s32 %v421_v6, 3  ;;  %p659_p12 = scmp.ne.s32.totalorder %s827_s18, %s658_s28  ;;  %s662_s29 = sshll.u32 %s736_s15, 4  ;;  %s663_s29 = int_to_ptr.vmem [resolvable:$false] %s662_s29 }
  0x19   : > { %593 = vmatprep.mubr.msk.f32.mxu0 %vm247_vm0, %v234_v1  ;;  %598 = vmatprep.mubr.msk.f32.mxu1 %vm247_vm0, %v571_v2  ;;  %v572_v4 = vld [vmem:[%s231_s5 + $0x18] sm:$0xff]  ;;  %s664_s30 = scalar_lea.vmem %s663_s29, 512  ;;  %p665_p1 = scmp.lt.s32.totalorder %s827_s18, %s663_s29 }
  0x1a   : > { %594 = vmatmul.mubr.msk.f32.vlgmr.msra.gmra.mxu0 %vm247_vm0, %v235_v3  ;;  %599 = vmatmul.mubr.msk.f32.vlgmr.msra.gmra.mxu1 %vm247_vm0, %v572_v4  ;;  %vm431_vm1 = vcmp.eq.s32.totalorder %v425_v9, %v424_v8  ;;  %vm430_vm2 = vcmp.eq.s32.totalorder %v425_v9, %v423_v7  ;;  %p660_p13 = pnand %p659_p12, %p799_p4  ;;  %p666_p2 = scmp.lt.s32.totalorder %s664_s30, %s658_s28 }
  0x1c   : > { %p661_p0 = pneg %p660_p13  ;;  %p667_p3 = por %p666_p2, %p665_p1 }
  0x1e   : > { %p668_p5 = pnand %p667_p3, %p661_p0 }
  0xda   : > { %v595_v11 = vpop.f32.mrf.mxu0  ;;  %v600_v12 = vpop.f32.mrf.mxu1 }
  0xdb   : > { %v326_v13 = vadd.f32 %v595_v11, %v573_v10  ;;  %v433_v14 = vsel %vm431_vm1, %v600_v12, 0.0 }
  0xdc   : > { %v320_v15 = vpop.f32.mrf.mxu0  ;;  %v411_v16 = vpop.f32.mrf.mxu1 }
  0xdd   : > { %v435_v17 = vadd.f32 %v433_v14, %v326_v13  ;;  %v321_v18 = vadd.f32 %v573_v10, %v320_v15  ;;  %v432_v19 = vsel %vm430_vm2, %v411_v16, 0.0 }
  0xdf   : > { %v437_v20 = vmul.f32 0.01, %v435_v17  ;;  %v434_v21 = vadd.f32 %v432_v19, %v321_v18 }
  0xe1   : > { %v439_v22 = vmax.f32 %v435_v17, %v437_v20  ;;  %v436_v23 = vmul.f32 0.01, %v434_v21 }
  0xe3   : > { %441 = vst [vmem:[%s216_s11 + $0x8] sm:$0xff] %v439_v22  ;;  %v438_v24 = vmax.f32 %v434_v21, %v436_v23 }
  0xe5   : > { %440 = vst [vmem:[%s216_s11] sm:$0xff] %v438_v24 }
  0xe6   : > { %671 = shalt.err (!%p668_p5)
}
  0xe7   : > { %s672_s4 = scalar_lea.hbm %s832_s26, 256  ;;  %s676_s7 = scalar_lea.hbm %s882_s3, 512 }
  0xe8   : > { %p673_p6 = scmp.ne.s32.totalorder %s832_s26, %s672_s4  ;;  %p677_p10 = scmp.lt.s32.totalorder %s832_s26, %s882_s3 }
  0xe9   : > { %p678_p11 = scmp.lt.s32.totalorder %s676_s7, %s672_s4 }
  0xea   : > { %p674_p7 = pnand %p673_p6, %p799_p4 }
  0xeb   : > { %p679_p12 = por %p678_p11, %p677_p10 }
  0xec   : > { %p675_p9 = pneg %p674_p7 }
  0xee   : > { %p680_p13 = pnand %p679_p12, %p675_p9 }
  0xf0   : > { %683 = shalt.err (!%p680_p13)
}
  0xf1   : > { %s737_s10 = smov 128   ;;  %s738_s11 = smov 8  }
  0xf2   : > { %601 = dma.vmem_to_hbm [thread:$0]  (%p799_p4), %s827_s18, 256, %s832_s26, %s834_s27, %s737_s10, %s737_s10, %s738_s11  }
  0xf3 PF: > { %p607_p0 = scmp.ge.s32.totalorder %s734_s17, 2  ;;  %s483_s19 = sand.u32 1, %s714_s12  }
  0xf4   : > { %s484_s21 = scalar_lea.sflag [#allocation3], %s483_s19 }
  0xf5   : > { %p604_p1 = pnand %p607_p0, %p806_p8 }
  0xf7   : > { %p605_p2 = pneg %p604_p1 }
  0xf9   : > { %709 = dma.done.wait (%p605_p2), %s484_s21, 256  }
  0xfa   : > { %711 = vsyncadd (%p605_p2), %s484_s21, 4294967040  ;;  %s16_s17 = sadd.s32 1, %s734_s17   ;;  %s885_s12 = smov %s718_s13 }
  0xfb   : > { %p13_p3 = scmp.ge.s32.totalorder %s16_s17, 4   ;;  %s886_s13 = smov %s722_s14 }
  0xfc   : > { %s887_s14 = smov %s812_s25  ;;  %s888_s15 = smov %s730_s16 }
  0xfd   : > { %s889_s16 = smov %s891_s20  ;;  %15 = sbr.rel (!%p13_p3) target bundleno = 4 (0x4), region = 79 }
 0x102   :  { %489 = vsyncpa [#allocation3], 1 }
 0x103   :  { %491 = vsyncpa [#allocation3 + $0x1], 1 }

</bundles_post_ra>
